<compile_context>
chip_gen: v7x
topology: tpu7x:2x2x1
jax: 0.10.0
libtpu: 0.0.40
codegen_flags: <defaults>
</compile_context>

<pallas_src>
import functools

import jax
import jax.numpy as jnp
from jax.experimental import pallas as pl
from jax.experimental.pallas import tpu as pltpu


def _coxph_tile_kernel(e_ref, risk_ref, q_ref, event_ref, loss_ref, *,
                       rows_per_chunk, values_are_binary):
    """Per-tile masked sum-exp + log, chunked over rows to bound VMEM temps.

    e_ref    : (1, BL)  f32   exp(pred_centered - global_max); 0 in padded lanes
    risk_ref : (TB, BL) int8 (or caller dtype)  nonzero => "j in risk set of i"
    q_ref    : (TB, 1)  f32   pred_centered - global_max
    event_ref: (TB, 1)  f32   1 = event, 0 = censored (0 in padded rows)
    loss_ref : (TB, 1)  f32   per-row contribution event_i * (lse_i - pred_i)
    """
    e = e_ref[...]                                              # (1, BL)

    def emit(row0, nrows):
        r = risk_ref[pl.ds(row0, nrows), :]                     # (nrows, BL)
        if values_are_binary:
            # Mask is exactly 0/1: unpack/convert/mul floor on the VPU with an
            # implicit row broadcast of e (no broadcast_to / where temporary).
            w = r.astype(jnp.float32) * e
        else:
            w = jnp.where(r != 0, e, jnp.float32(0.0))
        s = jnp.sum(w, axis=1, keepdims=True)                   # (nrows, 1) XLU
        # Guard padded / empty rows (their event weight is 0, so they
        # contribute exactly 0 without producing 0 * (-inf) = NaN).
        s = jnp.maximum(s, jnp.float32(1e-30))
        loss_ref[pl.ds(row0, nrows), :] = event_ref[pl.ds(row0, nrows), :] * (
            jnp.log(s) - q_ref[pl.ds(row0, nrows), :])

    tb = risk_ref.shape[0]
    n_full = tb // rows_per_chunk
    rem = tb - n_full * rows_per_chunk

    if n_full == 1 and rem == 0:
        emit(0, tb)
    else:
        def body(c, carry):
            emit(pl.multiple_of(c * rows_per_chunk, rows_per_chunk),
                 rows_per_chunk)
            return carry

        jax.lax.fori_loop(0, n_full, body, 0, unroll=False)
        if rem:                                   # static remainder (mult of 32)
            emit(n_full * rows_per_chunk, rem)


def _round_up(x, m):
    return ((x + m - 1) // m) * m


def _choose_row_tile(B, BL, target_bytes=4 << 20):
    """Row tile: ~target_bytes of riskset per grid step, multiple of 32, biased
    towards (a) dividing B exactly when B is 128-aligned (no riskset padding)
    and (b) an even tile count >= 2 (keeps both v7x TensorCores busy)."""
    tb = max(32, min(2048, target_bytes // BL))
    tb = max(32, (tb // 32) * 32)
    tb = min(tb, _round_up(B, 32))
    if B % 128 == 0:
        divisors = [c for c in range(tb, 31, -32) if B % c == 0]
        if divisors:
            for c in divisors:            # largest even-count divisor >= tb/2
                if B // c >= 2 and (B // c) % 2 == 0 and 2 * c >= tb:
                    return c
            return divisors[0]
    # Unaligned path (riskset is padded anyway): at least avoid a single tile.
    if -(-B // tb) == 1 and tb >= 64:
        half = _round_up((B + 1) // 2, 32)
        if half < tb:
            tb = half
    return tb


def coxph_loss(event, riskset, y_pred):
    """Negative partial log-likelihood of Cox's PH model (batch mean).

    event  : (B, 1) float/bool — 1 indicates an event, 0 censoring
    riskset: (B, B) bool/int   — row i = risk set of sample i (nonzero = in set)
    y_pred : (B, 1) float      — predicted risk scores
    Returns a scalar loss.
    """
    if y_pred.ndim != 2 or y_pred.shape[1] != 1:
        raise ValueError(f"predictions must be of shape (batch_size, 1), got {y_pred.shape}")
    if event.ndim != y_pred.ndim:
        raise ValueError("event and predictions must have the same number of dimensions")
    if riskset.ndim != 2:
        raise ValueError(f"riskset must have 2 dimensions, got {riskset.ndim}")

    B = y_pred.shape[0]

    pred = y_pred.astype(jnp.float32).reshape(B)
    ev = event.astype(jnp.float32).reshape(B)

    # Center (matches the reference; also cancels analytically in lse - pred),
    # then shift by the global max for numerical stability.  O(B) work; only B
    # transcendentals total (no per-row / B^2 exp in the kernel).
    pred = pred - jnp.mean(pred)
    gmax = jnp.max(pred)
    q = pred - gmax                        # (B,), <= 0
    e = jnp.exp(q)                         # (B,)

    # ---- tiling ------------------------------------------------------------
    BL = _round_up(B, 128)                 # lane axis (columns): keep vregs dense
    tb = _choose_row_tile(B, BL)           # ~4 MiB riskset rows per grid step
    n_tiles = -(-B // tb)
    BR = tb * n_tiles

    # ---- riskset handling: avoid extra whole-B^2 wrapper passes ------------
    if riskset.dtype == jnp.bool_:
        risk_in = riskset.astype(jnp.int8)   # one pass; values exactly 0/1
        binary = True
    else:
        risk_in = riskset                    # stream caller's dtype as-is
        binary = False

    if BR == B and BL == B:
        risk_p = risk_in                     # fast path: no B^2 pad at all
    else:
        risk_p = jnp.pad(risk_in, ((0, BR - B), (0, BL - B)))

    # O(B) vectors: zero-width pads are elided by XLA.
    e_p = jnp.pad(e, (0, BL - B)).reshape(1, BL)
    q_p = jnp.pad(q, (0, BR - B)).reshape(BR, 1)
    ev_p = jnp.pad(ev, (0, BR - B)).reshape(BR, 1)

    # In-kernel row-chunk size: ~512 KiB of riskset (=> ~2 MiB f32 temps) per
    # chunk so the large DMA tile never implies a tile-sized f32 intermediate.
    rpc = max(32, ((512 * 1024) // BL) // 32 * 32)
    rpc = min(rpc, tb)

    kernel = functools.partial(_coxph_tile_kernel,
                               rows_per_chunk=rpc,
                               values_are_binary=binary)

    per_row = pl.pallas_call(
        kernel,
        out_shape=jax.ShapeDtypeStruct((BR, 1), jnp.float32),
        grid_spec=pltpu.PrefetchScalarGridSpec(
            num_scalar_prefetch=0,
            grid=(n_tiles,),
            in_specs=[
                pl.BlockSpec((1, BL), lambda i: (0, 0)),    # e (same block every step)
                pl.BlockSpec((tb, BL), lambda i: (i, 0)),   # riskset row slab (contiguous DMA)
                pl.BlockSpec((tb, 1), lambda i: (i, 0)),    # q
                pl.BlockSpec((tb, 1), lambda i: (i, 0)),    # event
            ],
            out_specs=pl.BlockSpec((tb, 1), lambda i: (i, 0)),
        ),
        compiler_params=pltpu.CompilerParams(
            # Independent row tiles -> parallel grid axis (shards across the
            # two TensorCores on v7x; harmless on v5e/v6e).
            dimension_semantics=("parallel",),
            # Raises v5e's 16 MiB default scoped VMEM; matches v6e/v7x default.
            vmem_limit_bytes=32 * 1024 * 1024,
        ),
    )(e_p, risk_p, q_p, ev_p)

    return jnp.sum(per_row) / B


def _reference_coxph(event, riskset, y_pred):
    """Pure-JAX reference mirroring the PyTorch module."""
    event = event.astype(y_pred.dtype)
    riskset = riskset.astype(bool)
    pred = y_pred - jnp.mean(y_pred, axis=0, keepdims=True)
    masked = jnp.where(riskset, pred.T, -jnp.inf)
    lse = jax.scipy.special.logsumexp(masked, axis=1, keepdims=True)
    return jnp.mean(event * (lse - pred))


def _make_inputs(key, B):
    k_pred, k_event, k_time = jax.random.split(key, 3)
    y_pred = jax.random.normal(k_pred, (B, 1), dtype=jnp.float32)
    event = (jax.random.uniform(k_event, (B, 1)) > 0.5).astype(jnp.float32)
    # observed times -> riskset[i, j] = (t_j >= t_i); diagonal always True
    times = jax.random.uniform(k_time, (B,))
    riskset = (times[None, :] >= times[:, None])          # bool (B, B)
    return event, riskset, y_pred


if __name__ == "__main__":
    key0, key1 = jax.random.split(jax.random.PRNGKey(0))

    # Small case (exercises the padded path, single tile).
    event, riskset, y_pred = _make_inputs(key0, 8)
    loss = jax.block_until_ready(coxph_loss(event, riskset, y_pred))
    ref = _reference_coxph(event, riskset, y_pred)
    assert jnp.allclose(loss, ref, atol=1e-5, rtol=1e-5), (loss, ref)

    # 128-aligned case (exercises the no-pad fast path with 2 parallel tiles).
    event, riskset, y_pred = _make_inputs(key1, 256)
    loss = jax.block_until_ready(coxph_loss(event, riskset, y_pred))
    ref = _reference_coxph(event, riskset, y_pred)
    assert jnp.allclose(loss, ref, atol=1e-5, rtol=1e-5), (loss, ref)

    print("KERNEL_OK")
</pallas_src>

<mosaic_0001>
module attributes {stable_mosaic.version = 11 : i64} {
  func.func @_coxph_tile_kernel(%arg0: i32, %arg1: memref<1x128xf32, #tpu.memory_space<vmem>>, %arg2: memref<32x128xi8, #tpu.memory_space<vmem>>, %arg3: memref<32x1xf32, #tpu.memory_space<vmem>>, %arg4: memref<32x1xf32, #tpu.memory_space<vmem>>, %arg5: memref<32x1xf32, #tpu.memory_space<vmem>>) attributes {dimension_semantics = [#tpu.dimension_semantics<parallel>], iteration_bounds = array<i64: 1>, scalar_prefetch = 0 : i64, scratch_operands = 0 : i64, tpu.core_type = #tpu.core_type<tc>, window_params = [{pipeline_mode = #tpu.pipeline_mode<synchronous>, transform_indices = @transform_0, window_bounds = array<i64: 1, 128>}, {transform_indices = @transform_1, window_bounds = array<i64: 32, 128>}, {transform_indices = @transform_2, window_bounds = array<i64: 32, 1>}, {transform_indices = @transform_3, window_bounds = array<i64: 32, 1>}, {transform_indices = @transform_4, window_bounds = array<i64: 32, 1>}]} {
    %c0 = arith.constant 0 : index
    %c0_0 = arith.constant 0 : index
    %0 = vector.load %arg1[%c0, %c0_0] : memref<1x128xf32, #tpu.memory_space<vmem>>, vector<1x128xf32>
    %c0_1 = arith.constant 0 : index
    %c0_2 = arith.constant 0 : index
    %1 = vector.load %arg2[%c0_1, %c0_2] : memref<32x128xi8, #tpu.memory_space<vmem>>, vector<32x128xi8>
    %2 = arith.sitofp %1 : vector<32x128xi8> to vector<32x128xf32>
    %3 = vector.broadcast %0 : vector<1x128xf32> to vector<32x128xf32>
    %4 = arith.mulf %2, %3 : vector<32x128xf32>
    %cst = arith.constant dense<0.000000e+00> : vector<32xf32>
    %5 = vector.multi_reduction <add>, %4, %cst [1] : vector<32x128xf32> to vector<32xf32>
    %6 = vector.shape_cast %5 : vector<32xf32> to vector<32x1xf32>
    %cst_3 = arith.constant 1.000000e-30 : f32
    %7 = vector.broadcast %cst_3 : f32 to vector<32x1xf32>
    %8 = arith.maximumf %6, %7 : vector<32x1xf32>
    %c0_4 = arith.constant 0 : index
    %c0_5 = arith.constant 0 : index
    %9 = vector.load %arg4[%c0_4, %c0_5] : memref<32x1xf32, #tpu.memory_space<vmem>>, vector<32x1xf32>
    %10 = math.log %8 : vector<32x1xf32>
    %c0_6 = arith.constant 0 : index
    %c0_7 = arith.constant 0 : index
    %11 = vector.load %arg3[%c0_6, %c0_7] : memref<32x1xf32, #tpu.memory_space<vmem>>, vector<32x1xf32>
    %12 = arith.subf %10, %11 : vector<32x1xf32>
    %13 = arith.mulf %9, %12 : vector<32x1xf32>
    %c0_8 = arith.constant 0 : index
    %c0_9 = arith.constant 0 : index
    %14 = vector.load %arg5[%c0_8, %c0_9] : memref<32x1xf32, #tpu.memory_space<vmem>>, vector<32x1xf32>
    tpu.vector_store %arg5[%c0_8, %c0_9], %13 {strides = array<i32>} : memref<32x1xf32, #tpu.memory_space<vmem>>, vector<32x1xf32>,
    return
  }
  func.func @transform_0(%arg0: i32) -> (i32, i32) {
    %c0_i32 = arith.constant 0 : i32
    %c0_i32_0 = arith.constant 0 : i32
    %c0_i32_1 = arith.constant 0 : i32
    return %c0_i32, %c0_i32_0 : i32, i32
  }
  func.func @transform_1(%arg0: i32) -> (i32, i32) {
    %c0_i32 = arith.constant 0 : i32
    %c0_i32_0 = arith.constant 0 : i32
    return %arg0, %c0_i32 : i32, i32
  }
  func.func @transform_2(%arg0: i32) -> (i32, i32) {
    %c0_i32 = arith.constant 0 : i32
    %c0_i32_0 = arith.constant 0 : i32
    return %arg0, %c0_i32 : i32, i32
  }
  func.func @transform_3(%arg0: i32) -> (i32, i32) {
    %c0_i32 = arith.constant 0 : i32
    %c0_i32_0 = arith.constant 0 : i32
    return %arg0, %c0_i32 : i32, i32
  }
  func.func @transform_4(%arg0: i32) -> (i32, i32) {
    %c0_i32 = arith.constant 0 : i32
    %c0_i32_0 = arith.constant 0 : i32
    return %arg0, %c0_i32 : i32, i32
  }
}

</mosaic_0001>

<bundles_post_ra>
// kernel: tpu_custom_call.1
= control target key start
LH: loop header
LB: loop body
LE: loop exit
PB: predicated region body
PF: predicated region fallthrough
CT: control target
= control target key end

     0   :  { %vm73_vm0 = vcmask 7168   ;;  %s162_s0 = inlined_call_operand.vmem [shape: f32[1,128], index: 0, kind: input, shape index: {}]   ;;  %s163_s1 = inlined_call_operand.vmem [shape: s8[32,128], index: 1, kind: input, shape index: {}]   ;;  %s164_s2 = inlined_call_operand.vmem [shape: f32[32,1], index: 2, kind: input, shape index: {}]   ;;  %s165_s3 = inlined_call_operand.vmem [shape: f32[32,1], index: 3, kind: input, shape index: {}]   ;;  %s166_s4 = inlined_call_operand.vmem [shape: f32[32,1], index: 4, kind: output, shape index: {}]  }
   0x1   :  { %v18_v0 = vld [vmem:[%s163_s1] sm:$0xff]  ;;  %v63_v23 = vld [vmem:[%s164_s2 + $0x10] sm:$0xff]  ;;  %v64_v33 = vld [vmem:[%s164_s2 + $0x18] sm:$0xff] }
   0x2   :  { %v21_v1 = vunpack.c.2.s8 %v18_v0  ;;  %v19_v2 = vunpack.c.0.s8 %v18_v0  ;;  %v22_v3 = vunpack.c.3.s8 %v18_v0  ;;  %v20_v4 = vunpack.c.1.s8 %v18_v0  ;;  %v82_v5 = vld [vmem:[%s162_s0] ss:$0 sm:$0xff]  ;;  %v51_v27 = vld [vmem:[%s165_s3 + $0x10] sm:$0xff]  ;;  %v62_v37 = vld [vmem:[%s164_s2 + $0x8] sm:$0xff] }
   0x3   :  { %v61_v26 = vld [vmem:[%s164_s2] sm:$0xff]  ;;  %v52_v39 = vld [vmem:[%s165_s3 + $0x18] sm:$0xff]  ;;  %v50_v42 = vld [vmem:[%s165_s3 + $0x8] sm:$0xff] }
   0x4   :  { %v25_v6 = vcvt.s32.f32 %v21_v1  ;;  %v23_v7 = vcvt.s32.f32 %v19_v2  ;;  %v26_v8 = vcvt.s32.f32 %v22_v3  ;;  %v24_v9 = vcvt.s32.f32 %v20_v4  ;;  %v49_v30 = vld [vmem:[%s165_s3] sm:$0xff] }
   0x6   :  { %v35_v10 = vmul.f32 %v82_v5, %v25_v6  ;;  %v33_v11 = vmul.f32 %v82_v5, %v23_v7  ;;  %v36_v12 = vmul.f32 %v82_v5, %v26_v8  ;;  %v34_v13 = vmul.f32 %v82_v5, %v24_v9 }
   0x8   :  { %41 = vadd.xlane.f32.xlu1 %v35_v10  ;;  %37 = vadd.xlane.f32.xlu0 %v33_v11 }
   0xc   :  { %43 = vadd.xlane.f32.xlu1 %v36_v12  ;;  %39 = vadd.xlane.f32.xlu0 %v34_v13 }
  0x95   :  { %v42_v14 = vpop.xlane.xlu1 %41  ;;  %v38_v15 = vpop.xlane.xlu0 %37 }
  0x96   :  { %v47_v16 = vmax.f32 %v42_v14, 1e-30  ;;  %v45_v17 = vmax.f32 %v38_v15, 1e-30 }
  0x98   :  { %83 = vlog2.f32 %v47_v16 }
  0x99   :  { %85 = vlog2.f32 %v45_v17  ;;  %v44_v18 = vpop.xlane.xlu1 %43  ;;  %v40_v19 = vpop.xlane.xlu0 %39 }
  0x9a   :  { %v48_v20 = vmax.f32 %v44_v18, 1e-30  ;;  %v46_v21 = vmax.f32 %v40_v19, 1e-30 }
  0x9c   :  { %87 = vlog2.f32 %v48_v20 }
  0x9d   :  { %89 = vlog2.f32 %v46_v21 }
  0xa2   :  { %v84_v22 = vpop.eup %83 }
  0xa3   :  { %v86_v24 = vpop.eup %85  ;;  %v58_v25 = vmul.f32 0.6931472, %v84_v22 }
  0xa4   :  { %v54_v28 = vmul.f32 0.6931472, %v86_v24 }
  0xa5   :  { %v67_v29 = vsub.f32 %v58_v25, %v63_v23 }
  0xa6   :  { %v88_v31 = vpop.eup %87  ;;  %v65_v32 = vsub.f32 %v54_v28, %v61_v26 }
  0xa7   :  { %v90_v34 = vpop.eup %89  ;;  %v71_v35 = vmul.f32 %v67_v29, %v51_v27  ;;  %v60_v36 = vmul.f32 0.6931472, %v88_v31 }
  0xa8   :  { %v69_v38 = vmul.f32 %v65_v32, %v49_v30  ;;  %v56_v40 = vmul.f32 0.6931472, %v90_v34 }
  0xa9   :  { %76 = vst.msk [vmem:[%s166_s4 + $0x10] sm:$0xff] %vm73_vm0, %v71_v35  ;;  %v68_v41 = vsub.f32 %v60_v36, %v64_v33 }
  0xaa   :  { %74 = vst.msk [vmem:[%s166_s4] sm:$0xff] %vm73_vm0, %v69_v38  ;;  %v66_v43 = vsub.f32 %v56_v40, %v62_v37 }
  0xab   :  { %v72_v44 = vmul.f32 %v68_v41, %v52_v39 }
  0xac   :  { %v70_v45 = vmul.f32 %v66_v43, %v50_v42 }
  0xad   :  { %77 = vst.msk [vmem:[%s166_s4 + $0x18] sm:$0xff] %vm73_vm0, %v72_v44 }
  0xae   :  { %75 = vst.msk [vmem:[%s166_s4 + $0x8] sm:$0xff] %vm73_vm0, %v70_v45 }

</bundles_post_ra>
